<compile_context>
chip_gen: v7x
topology: tpu7x:2x2x1
jax: 0.10.0
libtpu: 0.0.40
codegen_flags: <defaults>
</compile_context>

<pallas_src>
import jax
import jax.numpy as jnp
from jax.experimental import pallas as pl
from jax.experimental.pallas import tpu as pltpu

_LANE = 128


def _t2pc_kernel(tok_ref, table_ref, whh_ref, b1_ref, b2_ref, w1_hbm, w2_hbm,
                 out_ref, w1_buf, w2_buf, dma_sem):
    # tok_ref:   (B, T) int32 in SMEM
    # table_ref: (V, 4H) f32   precomputed emb @ W_ih^T + (b_ih + b_hh)
    # whh_ref:   (H, 4H) bf16  recurrent weights, packed gate layout [i,f,g,o]
    # b1_ref:    (1, 512) f32 ; b2_ref: (1, OP) f32
    # w1_hbm:    (H, 512) bf16 in HBM ; w2_hbm: (512, OP) bf16 in HBM
    # out_ref:   (B, OP) f32
    B, T = tok_ref.shape
    H, _ = whh_ref.shape
    bf16 = jnp.bfloat16

    # Kick off the fc-weight DMAs immediately; they are only consumed after
    # the T-step recurrence, so their HBM transfer hides under the serial path.
    cp1 = pltpu.make_async_copy(w1_hbm, w1_buf, dma_sem.at[0])
    cp2 = pltpu.make_async_copy(w2_hbm, w2_buf, dma_sem.at[1])
    cp1.start()
    cp2.start()

    whh = whh_ref[...]                                   # loaded once, resident

    # Pre-gather the per-(b, t) x-projections: independent of h, so these
    # dynamic row reads schedule off the serial critical path.
    xg = []
    for t in range(T):
        rows = [table_ref[pl.ds(tok_ref[b, t], 1), :] for b in range(B)]
        xg.append(jnp.concatenate(rows, axis=0))         # (B, 4H) f32

    h = jnp.zeros((B, H), jnp.float32)
    c = jnp.zeros((B, H), jnp.float32)

    # Fully unrolled recurrence; only h @ W_hh sits on the serial path.
    for t in range(T):
        gates = xg[t] + jnp.dot(h.astype(bf16), whh,
                                preferred_element_type=jnp.float32)  # (B, 4H)
        # Two full-vreg transcendental chains per step (EUP), then cheap
        # lane-slab slices (XLU) to split the packed gates [i, f, g, o].
        sig = jax.nn.sigmoid(gates)
        tg = jnp.tanh(gates)
        i_g = sig[:, 0 * H:1 * H]
        f_g = sig[:, 1 * H:2 * H]
        g_g = tg[:, 2 * H:3 * H]
        o_g = sig[:, 3 * H:4 * H]
        c = f_g * c + i_g * g_g
        h = o_g * jnp.tanh(c)

    # fc weights must have landed by now.
    cp1.wait()
    cp2.wait()

    # fc1 + ReLU
    x1 = jnp.maximum(
        jnp.dot(h.astype(bf16), w1_buf[...],
                preferred_element_type=jnp.float32) + b1_ref[...], 0.0)
    # fc2 -> lane-dense padded output
    out_ref[...] = (jnp.dot(x1.astype(bf16), w2_buf[...],
                            preferred_element_type=jnp.float32)
                    + b2_ref[...])


def text_to_pointcloud(x_tokens, params, num_points, point_dim):
    B, T = x_tokens.shape
    V, E = params["embedding"].shape
    H = params["w_hh_t"].shape[0]
    out_dim = num_points * point_dim
    OP = max(_LANE, pl.cdiv(out_dim, _LANE) * _LANE)      # lane-dense fc2 width
    f32, bf16 = jnp.float32, jnp.bfloat16

    # One x-projection per vocab entry (V=50) instead of one per (b, t);
    # the per-token gather happens inside the kernel.
    table = (params["embedding"].astype(f32) @ params["w_ih_t"].astype(f32)
             + params["b_gates"].astype(f32))             # (V, 4H) f32

    whh = params["w_hh_t"].astype(bf16)                   # (H, 4H)
    w1 = params["w1_t"].astype(bf16)                      # (H, 512)
    b1 = params["b1"].astype(f32)                         # (1, 512)
    w2 = jnp.pad(params["w2_t"].astype(f32),
                 ((0, 0), (0, OP - out_dim))).astype(bf16)  # (512, OP)
    b2 = jnp.pad(params["b2"].astype(f32), ((0, 0), (0, OP - out_dim)))

    vmem = pltpu.MemorySpace.VMEM
    smem = pltpu.MemorySpace.SMEM
    out_pad = pl.pallas_call(
        _t2pc_kernel,
        out_shape=jax.ShapeDtypeStruct((B, OP), f32),
        in_specs=[
            pl.BlockSpec(memory_space=smem),      # token ids
            pl.BlockSpec(memory_space=vmem),      # projected-embedding table
            pl.BlockSpec(memory_space=vmem),      # W_hh
            pl.BlockSpec(memory_space=vmem),      # b1
            pl.BlockSpec(memory_space=vmem),      # b2
            pl.BlockSpec(memory_space=pl.ANY),    # W_fc1 (HBM, manual DMA)
            pl.BlockSpec(memory_space=pl.ANY),    # W_fc2 (HBM, manual DMA)
        ],
        out_specs=pl.BlockSpec(memory_space=vmem),
        scratch_shapes=[
            pltpu.VMEM((H, 512), bf16),           # W_fc1 landing buffer
            pltpu.VMEM((512, OP), bf16),          # W_fc2 landing buffer
            pltpu.SemaphoreType.DMA((2,)),
        ],
    )(x_tokens.astype(jnp.int32), table, whh, b1, b2, w1, w2)

    return out_pad[:, :out_dim].reshape(B, num_points, point_dim)


def init_params(key, vocab_size, embed_size, hidden_size, num_points, point_dim):
    ks = jax.random.split(key, 9)
    H = hidden_size
    out_dim = num_points * point_dim
    scale = 0.1
    b_ih = scale * jax.random.normal(ks[3], (1, 4 * H), jnp.float32)
    b_hh = scale * jax.random.normal(ks[4], (1, 4 * H), jnp.float32)
    return {
        "embedding": scale * jax.random.normal(
            ks[0], (vocab_size, embed_size), jnp.float32),
        # LSTM weights stored transposed: (E, 4H) and (H, 4H), gate order i,f,g,o
        "w_ih_t": scale * jax.random.normal(
            ks[1], (embed_size, 4 * H), jnp.float32),
        "w_hh_t": scale * jax.random.normal(
            ks[2], (H, 4 * H), jnp.float32),
        "b_gates": b_ih + b_hh,   # PyTorch adds b_ih + b_hh; combined here
        "w1_t": scale * jax.random.normal(ks[5], (H, 512), jnp.float32),
        "b1": scale * jax.random.normal(ks[6], (1, 512), jnp.float32),
        "w2_t": scale * jax.random.normal(ks[7], (512, out_dim), jnp.float32),
        "b2": scale * jax.random.normal(ks[8], (1, out_dim), jnp.float32),
    }


def _reference(x_tokens, params, num_points, point_dim):
    """Pure-JAX f32 reference matching the PyTorch forward."""
    f32 = jnp.float32
    B, T = x_tokens.shape
    H = params["w_hh_t"].shape[0]
    emb = params["embedding"].astype(f32)[x_tokens]        # (B, T, E)
    h = jnp.zeros((B, H), f32)
    c = jnp.zeros((B, H), f32)
    for t in range(T):
        gates = (emb[:, t, :] @ params["w_ih_t"].astype(f32)
                 + h @ params["w_hh_t"].astype(f32)
                 + params["b_gates"].astype(f32))
        i_g = jax.nn.sigmoid(gates[:, 0 * H:1 * H])
        f_g = jax.nn.sigmoid(gates[:, 1 * H:2 * H])
        g_g = jnp.tanh(gates[:, 2 * H:3 * H])
        o_g = jax.nn.sigmoid(gates[:, 3 * H:4 * H])
        c = f_g * c + i_g * g_g
        h = o_g * jnp.tanh(c)
    x1 = jnp.maximum(h @ params["w1_t"].astype(f32) + params["b1"].astype(f32), 0.0)
    out = x1 @ params["w2_t"].astype(f32) + params["b2"].astype(f32)
    return out.reshape(B, num_points, point_dim)


if __name__ == "__main__":
    vocab_size, embed_size, hidden_size = 50, 32, 32
    num_points, point_dim = 16, 3
    B, T = 2, 8

    key = jax.random.PRNGKey(0)
    pkey, xkey = jax.random.split(key)
    params = init_params(pkey, vocab_size, embed_size, hidden_size,
                         num_points, point_dim)
    x = jax.random.randint(xkey, (B, T), 0, vocab_size, dtype=jnp.int32)

    out = text_to_pointcloud(x, params, num_points, point_dim)
    jax.block_until_ready(out)
    assert out.shape == (B, num_points, point_dim)
    assert out.dtype == jnp.float32

    # Correctness vs. f32 reference (bf16 MXU inputs -> generous tolerance).
    ref = _reference(x, params, num_points, point_dim)
    assert jnp.allclose(out, ref, rtol=5e-2, atol=5e-2), "mismatch vs reference"

    print("KERNEL_OK")
</pallas_src>

<mosaic_0001>
module attributes {stable_mosaic.version = 11 : i64} {
  func.func @_t2pc_kernel(%arg0: memref<2x8xi32, #tpu.memory_space<smem>>, %arg1: memref<50x128xf32, #tpu.memory_space<vmem>>, %arg2: memref<32x128xbf16, #tpu.memory_space<vmem>>, %arg3: memref<1x512xf32, #tpu.memory_space<vmem>>, %arg4: memref<1x128xf32, #tpu.memory_space<vmem>>, %arg5: memref<32x512xbf16, #tpu.memory_space<any>>, %arg6: memref<512x128xbf16, #tpu.memory_space<any>>, %arg7: memref<2x128xf32, #tpu.memory_space<vmem>>, %arg8: memref<32x512xbf16, #tpu.memory_space<vmem>>, %arg9: memref<512x128xbf16, #tpu.memory_space<vmem>>, %arg10: memref<2x!tpu.dma_semaphore, #tpu.memory_space<semaphore_mem>>) attributes {dimension_semantics = [], scalar_prefetch = 0 : i64, scratch_operands = 3 : i64, tpu.core_type = #tpu.core_type<tc>} {
    %c0_i32 = arith.constant 0 : i32
    %0 = tpu.memref_slice %arg10[%c0_i32] : memref<2x!tpu.dma_semaphore, #tpu.memory_space<semaphore_mem>> -> memref<1x!tpu.dma_semaphore, #tpu.memory_space<semaphore_mem>>
    %1 = tpu.memref_squeeze %0 : memref<1x!tpu.dma_semaphore, #tpu.memory_space<semaphore_mem>> -> memref<!tpu.dma_semaphore, #tpu.memory_space<semaphore_mem>>
    tpu.enqueue_dma source(%arg5 : memref<32x512xbf16, #tpu.memory_space<any>>) target(%arg8 : memref<32x512xbf16, #tpu.memory_space<vmem>>) target_semaphore(%1 : memref<!tpu.dma_semaphore, #tpu.memory_space<semaphore_mem>>)
    %c1_i32 = arith.constant 1 : i32
    %2 = tpu.memref_slice %arg10[%c1_i32] : memref<2x!tpu.dma_semaphore, #tpu.memory_space<semaphore_mem>> -> memref<1x!tpu.dma_semaphore, #tpu.memory_space<semaphore_mem>>
    %3 = tpu.memref_squeeze %2 : memref<1x!tpu.dma_semaphore, #tpu.memory_space<semaphore_mem>> -> memref<!tpu.dma_semaphore, #tpu.memory_space<semaphore_mem>>
    tpu.enqueue_dma source(%arg6 : memref<512x128xbf16, #tpu.memory_space<any>>) target(%arg9 : memref<512x128xbf16, #tpu.memory_space<vmem>>) target_semaphore(%3 : memref<!tpu.dma_semaphore, #tpu.memory_space<semaphore_mem>>)
    %c0 = arith.constant 0 : index
    %c0_0 = arith.constant 0 : index
    %4 = vector.load %arg2[%c0, %c0_0] : memref<32x128xbf16, #tpu.memory_space<vmem>>, vector<32x128xbf16>
    %c0_1 = arith.constant 0 : index
    %c0_2 = arith.constant 0 : index
    %5 = memref.load %arg0[%c0_1, %c0_2] : memref<2x8xi32, #tpu.memory_space<smem>>
    %6 = arith.index_cast %5 : i32 to index
    %c0_3 = arith.constant 0 : index
    %7 = vector.load %arg1[%6, %c0_3] : memref<50x128xf32, #tpu.memory_space<vmem>>, vector<1x128xf32>
    %c1 = arith.constant 1 : index
    %c0_4 = arith.constant 0 : index
    %8 = memref.load %arg0[%c1, %c0_4] : memref<2x8xi32, #tpu.memory_space<smem>>
    %9 = arith.index_cast %8 : i32 to index
    %c0_5 = arith.constant 0 : index
    %10 = vector.load %arg1[%9, %c0_5] : memref<50x128xf32, #tpu.memory_space<vmem>>, vector<1x128xf32>
    %11 = tpu.concatenate %7, %10 in 0 : vector<1x128xf32>, vector<1x128xf32> -> vector<2x128xf32>
    %c0_6 = arith.constant 0 : index
    %c1_7 = arith.constant 1 : index
    %12 = memref.load %arg0[%c0_6, %c1_7] : memref<2x8xi32, #tpu.memory_space<smem>>
    %13 = arith.index_cast %12 : i32 to index
    %c0_8 = arith.constant 0 : index
    %14 = vector.load %arg1[%13, %c0_8] : memref<50x128xf32, #tpu.memory_space<vmem>>, vector<1x128xf32>
    %c1_9 = arith.constant 1 : index
    %c1_10 = arith.constant 1 : index
    %15 = memref.load %arg0[%c1_9, %c1_10] : memref<2x8xi32, #tpu.memory_space<smem>>
    %16 = arith.index_cast %15 : i32 to index
    %c0_11 = arith.constant 0 : index
    %17 = vector.load %arg1[%16, %c0_11] : memref<50x128xf32, #tpu.memory_space<vmem>>, vector<1x128xf32>
    %18 = tpu.concatenate %14, %17 in 0 : vector<1x128xf32>, vector<1x128xf32> -> vector<2x128xf32>
    %c0_12 = arith.constant 0 : index
    %c2 = arith.constant 2 : index
    %19 = memref.load %arg0[%c0_12, %c2] : memref<2x8xi32, #tpu.memory_space<smem>>
    %20 = arith.index_cast %19 : i32 to index
    %c0_13 = arith.constant 0 : index
    %21 = vector.load %arg1[%20, %c0_13] : memref<50x128xf32, #tpu.memory_space<vmem>>, vector<1x128xf32>
    %c1_14 = arith.constant 1 : index
    %c2_15 = arith.constant 2 : index
    %22 = memref.load %arg0[%c1_14, %c2_15] : memref<2x8xi32, #tpu.memory_space<smem>>
    %23 = arith.index_cast %22 : i32 to index
    %c0_16 = arith.constant 0 : index
    %24 = vector.load %arg1[%23, %c0_16] : memref<50x128xf32, #tpu.memory_space<vmem>>, vector<1x128xf32>
    %25 = tpu.concatenate %21, %24 in 0 : vector<1x128xf32>, vector<1x128xf32> -> vector<2x128xf32>
    %c0_17 = arith.constant 0 : index
    %c3 = arith.constant 3 : index
    %26 = memref.load %arg0[%c0_17, %c3] : memref<2x8xi32, #tpu.memory_space<smem>>
    %27 = arith.index_cast %26 : i32 to index
    %c0_18 = arith.constant 0 : index
    %28 = vector.load %arg1[%27, %c0_18] : memref<50x128xf32, #tpu.memory_space<vmem>>, vector<1x128xf32>
    %c1_19 = arith.constant 1 : index
    %c3_20 = arith.constant 3 : index
    %29 = memref.load %arg0[%c1_19, %c3_20] : memref<2x8xi32, #tpu.memory_space<smem>>
    %30 = arith.index_cast %29 : i32 to index
    %c0_21 = arith.constant 0 : index
    %31 = vector.load %arg1[%30, %c0_21] : memref<50x128xf32, #tpu.memory_space<vmem>>, vector<1x128xf32>
    %32 = tpu.concatenate %28, %31 in 0 : vector<1x128xf32>, vector<1x128xf32> -> vector<2x128xf32>
    %c0_22 = arith.constant 0 : index
    %c4 = arith.constant 4 : index
    %33 = memref.load %arg0[%c0_22, %c4] : memref<2x8xi32, #tpu.memory_space<smem>>
    %34 = arith.index_cast %33 : i32 to index
    %c0_23 = arith.constant 0 : index
    %35 = vector.load %arg1[%34, %c0_23] : memref<50x128xf32, #tpu.memory_space<vmem>>, vector<1x128xf32>
    %c1_24 = arith.constant 1 : index
    %c4_25 = arith.constant 4 : index
    %36 = memref.load %arg0[%c1_24, %c4_25] : memref<2x8xi32, #tpu.memory_space<smem>>
    %37 = arith.index_cast %36 : i32 to index
    %c0_26 = arith.constant 0 : index
    %38 = vector.load %arg1[%37, %c0_26] : memref<50x128xf32, #tpu.memory_space<vmem>>, vector<1x128xf32>
    %39 = tpu.concatenate %35, %38 in 0 : vector<1x128xf32>, vector<1x128xf32> -> vector<2x128xf32>
    %c0_27 = arith.constant 0 : index
    %c5 = arith.constant 5 : index
    %40 = memref.load %arg0[%c0_27, %c5] : memref<2x8xi32, #tpu.memory_space<smem>>
    %41 = arith.index_cast %40 : i32 to index
    %c0_28 = arith.constant 0 : index
    %42 = vector.load %arg1[%41, %c0_28] : memref<50x128xf32, #tpu.memory_space<vmem>>, vector<1x128xf32>
    %c1_29 = arith.constant 1 : index
    %c5_30 = arith.constant 5 : index
    %43 = memref.load %arg0[%c1_29, %c5_30] : memref<2x8xi32, #tpu.memory_space<smem>>
    %44 = arith.index_cast %43 : i32 to index
    %c0_31 = arith.constant 0 : index
    %45 = vector.load %arg1[%44, %c0_31] : memref<50x128xf32, #tpu.memory_space<vmem>>, vector<1x128xf32>
    %46 = tpu.concatenate %42, %45 in 0 : vector<1x128xf32>, vector<1x128xf32> -> vector<2x128xf32>
    %c0_32 = arith.constant 0 : index
    %c6 = arith.constant 6 : index
    %47 = memref.load %arg0[%c0_32, %c6] : memref<2x8xi32, #tpu.memory_space<smem>>
    %48 = arith.index_cast %47 : i32 to index
    %c0_33 = arith.constant 0 : index
    %49 = vector.load %arg1[%48, %c0_33] : memref<50x128xf32, #tpu.memory_space<vmem>>, vector<1x128xf32>
    %c1_34 = arith.constant 1 : index
    %c6_35 = arith.constant 6 : index
    %50 = memref.load %arg0[%c1_34, %c6_35] : memref<2x8xi32, #tpu.memory_space<smem>>
    %51 = arith.index_cast %50 : i32 to index
    %c0_36 = arith.constant 0 : index
    %52 = vector.load %arg1[%51, %c0_36] : memref<50x128xf32, #tpu.memory_space<vmem>>, vector<1x128xf32>
    %53 = tpu.concatenate %49, %52 in 0 : vector<1x128xf32>, vector<1x128xf32> -> vector<2x128xf32>
    %c0_37 = arith.constant 0 : index
    %c7 = arith.constant 7 : index
    %54 = memref.load %arg0[%c0_37, %c7] : memref<2x8xi32, #tpu.memory_space<smem>>
    %55 = arith.index_cast %54 : i32 to index
    %c0_38 = arith.constant 0 : index
    %56 = vector.load %arg1[%55, %c0_38] : memref<50x128xf32, #tpu.memory_space<vmem>>, vector<1x128xf32>
    %c1_39 = arith.constant 1 : index
    %c7_40 = arith.constant 7 : index
    %57 = memref.load %arg0[%c1_39, %c7_40] : memref<2x8xi32, #tpu.memory_space<smem>>
    %58 = arith.index_cast %57 : i32 to index
    %c0_41 = arith.constant 0 : index
    %59 = vector.load %arg1[%58, %c0_41] : memref<50x128xf32, #tpu.memory_space<vmem>>, vector<1x128xf32>
    %60 = tpu.concatenate %56, %59 in 0 : vector<1x128xf32>, vector<1x128xf32> -> vector<2x128xf32>
    %cst = arith.constant 0.000000e+00 : f32
    %61 = vector.broadcast %cst : f32 to vector<2x32xf32>
    %cst_42 = arith.constant 0.000000e+00 : f32
    %62 = vector.broadcast %cst_42 : f32 to vector<2x32xf32>
    %63 = arith.truncf %61 : vector<2x32xf32> to vector<2x32xbf16>
    %cst_43 = arith.constant dense<0.000000e+00> : vector<2x128xf32>
    %64 = tpu.matmul %63, %4, %cst_43 {dimension_numbers = #tpu.dot_dimension_numbers<[1], [0], [0], [1], [0, 0, 1, 1], [], []>} : vector<2x32xbf16>, vector<32x128xbf16>, vector<2x128xf32> -> vector<2x128xf32>
    %65 = arith.addf %11, %64 : vector<2x128xf32>
    %66 = arith.negf %65 : vector<2x128xf32>
    %67 = math.exp %66 : vector<2x128xf32>
    %cst_44 = arith.constant 1.000000e+00 : f32
    %68 = vector.broadcast %cst_44 : f32 to vector<2x128xf32>
    %69 = arith.addf %68, %67 : vector<2x128xf32>
    %70 = arith.divf %68, %69 : vector<2x128xf32>
    %71 = math.tanh %65 : vector<2x128xf32>
    %72 = vector.extract_strided_slice %70 {offsets = [0, 0], sizes = [2, 32], strides = [1, 1]} : vector<2x128xf32> to vector<2x32xf32>
    %73 = vector.extract_strided_slice %70 {offsets = [0, 32], sizes = [2, 32], strides = [1, 1]} : vector<2x128xf32> to vector<2x32xf32>
    %74 = vector.extract_strided_slice %71 {offsets = [0, 64], sizes = [2, 32], strides = [1, 1]} : vector<2x128xf32> to vector<2x32xf32>
    %75 = vector.extract_strided_slice %70 {offsets = [0, 96], sizes = [2, 32], strides = [1, 1]} : vector<2x128xf32> to vector<2x32xf32>
    %76 = arith.mulf %73, %62 : vector<2x32xf32>
    %77 = arith.mulf %72, %74 : vector<2x32xf32>
    %78 = arith.addf %76, %77 : vector<2x32xf32>
    %79 = math.tanh %78 : vector<2x32xf32>
    %80 = arith.mulf %75, %79 : vector<2x32xf32>
    %81 = arith.truncf %80 : vector<2x32xf32> to vector<2x32xbf16>
    %cst_45 = arith.constant dense<0.000000e+00> : vector<2x128xf32>
    %82 = tpu.matmul %81, %4, %cst_45 {dimension_numbers = #tpu.dot_dimension_numbers<[1], [0], [0], [1], [0, 0, 1, 1], [], []>} : vector<2x32xbf16>, vector<32x128xbf16>, vector<2x128xf32> -> vector<2x128xf32>
    %83 = arith.addf %18, %82 : vector<2x128xf32>
    %84 = arith.negf %83 : vector<2x128xf32>
    %85 = math.exp %84 : vector<2x128xf32>
    %cst_46 = arith.constant 1.000000e+00 : f32
    %86 = vector.broadcast %cst_46 : f32 to vector<2x128xf32>
    %87 = arith.addf %86, %85 : vector<2x128xf32>
    %88 = arith.divf %86, %87 : vector<2x128xf32>
    %89 = math.tanh %83 : vector<2x128xf32>
    %90 = vector.extract_strided_slice %88 {offsets = [0, 0], sizes = [2, 32], strides = [1, 1]} : vector<2x128xf32> to vector<2x32xf32>
    %91 = vector.extract_strided_slice %88 {offsets = [0, 32], sizes = [2, 32], strides = [1, 1]} : vector<2x128xf32> to vector<2x32xf32>
    %92 = vector.extract_strided_slice %89 {offsets = [0, 64], sizes = [2, 32], strides = [1, 1]} : vector<2x128xf32> to vector<2x32xf32>
    %93 = vector.extract_strided_slice %88 {offsets = [0, 96], sizes = [2, 32], strides = [1, 1]} : vector<2x128xf32> to vector<2x32xf32>
    %94 = arith.mulf %91, %78 : vector<2x32xf32>
    %95 = arith.mulf %90, %92 : vector<2x32xf32>
    %96 = arith.addf %94, %95 : vector<2x32xf32>
    %97 = math.tanh %96 : vector<2x32xf32>
    %98 = arith.mulf %93, %97 : vector<2x32xf32>
    %99 = arith.truncf %98 : vector<2x32xf32> to vector<2x32xbf16>
    %cst_47 = arith.constant dense<0.000000e+00> : vector<2x128xf32>
    %100 = tpu.matmul %99, %4, %cst_47 {dimension_numbers = #tpu.dot_dimension_numbers<[1], [0], [0], [1], [0, 0, 1, 1], [], []>} : vector<2x32xbf16>, vector<32x128xbf16>, vector<2x128xf32> -> vector<2x128xf32>
    %101 = arith.addf %25, %100 : vector<2x128xf32>
    %102 = arith.negf %101 : vector<2x128xf32>
    %103 = math.exp %102 : vector<2x128xf32>
    %cst_48 = arith.constant 1.000000e+00 : f32
    %104 = vector.broadcast %cst_48 : f32 to vector<2x128xf32>
    %105 = arith.addf %104, %103 : vector<2x128xf32>
    %106 = arith.divf %104, %105 : vector<2x128xf32>
    %107 = math.tanh %101 : vector<2x128xf32>
    %108 = vector.extract_strided_slice %106 {offsets = [0, 0], sizes = [2, 32], strides = [1, 1]} : vector<2x128xf32> to vector<2x32xf32>
    %109 = vector.extract_strided_slice %106 {offsets = [0, 32], sizes = [2, 32], strides = [1, 1]} : vector<2x128xf32> to vector<2x32xf32>
    %110 = vector.extract_strided_slice %107 {offsets = [0, 64], sizes = [2, 32], strides = [1, 1]} : vector<2x128xf32> to vector<2x32xf32>
    %111 = vector.extract_strided_slice %106 {offsets = [0, 96], sizes = [2, 32], strides = [1, 1]} : vector<2x128xf32> to vector<2x32xf32>
    %112 = arith.mulf %109, %96 : vector<2x32xf32>
    %113 = arith.mulf %108, %110 : vector<2x32xf32>
    %114 = arith.addf %112, %113 : vector<2x32xf32>
    %115 = math.tanh %114 : vector<2x32xf32>
    %116 = arith.mulf %111, %115 : vector<2x32xf32>
    %117 = arith.truncf %116 : vector<2x32xf32> to vector<2x32xbf16>
    %cst_49 = arith.constant dense<0.000000e+00> : vector<2x128xf32>
    %118 = tpu.matmul %117, %4, %cst_49 {dimension_numbers = #tpu.dot_dimension_numbers<[1], [0], [0], [1], [0, 0, 1, 1], [], []>} : vector<2x32xbf16>, vector<32x128xbf16>, vector<2x128xf32> -> vector<2x128xf32>
    %119 = arith.addf %32, %118 : vector<2x128xf32>
    %120 = arith.negf %119 : vector<2x128xf32>
    %121 = math.exp %120 : vector<2x128xf32>
    %cst_50 = arith.constant 1.000000e+00 : f32
    %122 = vector.broadcast %cst_50 : f32 to vector<2x128xf32>
    %123 = arith.addf %122, %121 : vector<2x128xf32>
    %124 = arith.divf %122, %123 : vector<2x128xf32>
    %125 = math.tanh %119 : vector<2x128xf32>
    %126 = vector.extract_strided_slice %124 {offsets = [0, 0], sizes = [2, 32], strides = [1, 1]} : vector<2x128xf32> to vector<2x32xf32>
    %127 = vector.extract_strided_slice %124 {offsets = [0, 32], sizes = [2, 32], strides = [1, 1]} : vector<2x128xf32> to vector<2x32xf32>
    %128 = vector.extract_strided_slice %125 {offsets = [0, 64], sizes = [2, 32], strides = [1, 1]} : vector<2x128xf32> to vector<2x32xf32>
    %129 = vector.extract_strided_slice %124 {offsets = [0, 96], sizes = [2, 32], strides = [1, 1]} : vector<2x128xf32> to vector<2x32xf32>
    %130 = arith.mulf %127, %114 : vector<2x32xf32>
    %131 = arith.mulf %126, %128 : vector<2x32xf32>
    %132 = arith.addf %130, %131 : vector<2x32xf32>
    %133 = math.tanh %132 : vector<2x32xf32>
    %134 = arith.mulf %129, %133 : vector<2x32xf32>
    %135 = arith.truncf %134 : vector<2x32xf32> to vector<2x32xbf16>
    %cst_51 = arith.constant dense<0.000000e+00> : vector<2x128xf32>
    %136 = tpu.matmul %135, %4, %cst_51 {dimension_numbers = #tpu.dot_dimension_numbers<[1], [0], [0], [1], [0, 0, 1, 1], [], []>} : vector<2x32xbf16>, vector<32x128xbf16>, vector<2x128xf32> -> vector<2x128xf32>
    %137 = arith.addf %39, %136 : vector<2x128xf32>
    %138 = arith.negf %137 : vector<2x128xf32>
    %139 = math.exp %138 : vector<2x128xf32>
    %cst_52 = arith.constant 1.000000e+00 : f32
    %140 = vector.broadcast %cst_52 : f32 to vector<2x128xf32>
    %141 = arith.addf %140, %139 : vector<2x128xf32>
    %142 = arith.divf %140, %141 : vector<2x128xf32>
    %143 = math.tanh %137 : vector<2x128xf32>
    %144 = vector.extract_strided_slice %142 {offsets = [0, 0], sizes = [2, 32], strides = [1, 1]} : vector<2x128xf32> to vector<2x32xf32>
    %145 = vector.extract_strided_slice %142 {offsets = [0, 32], sizes = [2, 32], strides = [1, 1]} : vector<2x128xf32> to vector<2x32xf32>
    %146 = vector.extract_strided_slice %143 {offsets = [0, 64], sizes = [2, 32], strides = [1, 1]} : vector<2x128xf32> to vector<2x32xf32>
    %147 = vector.extract_strided_slice %142 {offsets = [0, 96], sizes = [2, 32], strides = [1, 1]} : vector<2x128xf32> to vector<2x32xf32>
    %148 = arith.mulf %145, %132 : vector<2x32xf32>
    %149 = arith.mulf %144, %146 : vector<2x32xf32>
    %150 = arith.addf %148, %149 : vector<2x32xf32>
    %151 = math.tanh %150 : vector<2x32xf32>
    %152 = arith.mulf %147, %151 : vector<2x32xf32>
    %153 = arith.truncf %152 : vector<2x32xf32> to vector<2x32xbf16>
    %cst_53 = arith.constant dense<0.000000e+00> : vector<2x128xf32>
    %154 = tpu.matmul %153, %4, %cst_53 {dimension_numbers = #tpu.dot_dimension_numbers<[1], [0], [0], [1], [0, 0, 1, 1], [], []>} : vector<2x32xbf16>, vector<32x128xbf16>, vector<2x128xf32> -> vector<2x128xf32>
    %155 = arith.addf %46, %154 : vector<2x128xf32>
    %156 = arith.negf %155 : vector<2x128xf32>
    %157 = math.exp %156 : vector<2x128xf32>
    %cst_54 = arith.constant 1.000000e+00 : f32
    %158 = vector.broadcast %cst_54 : f32 to vector<2x128xf32>
    %159 = arith.addf %158, %157 : vector<2x128xf32>
    %160 = arith.divf %158, %159 : vector<2x128xf32>
    %161 = math.tanh %155 : vector<2x128xf32>
    %162 = vector.extract_strided_slice %160 {offsets = [0, 0], sizes = [2, 32], strides = [1, 1]} : vector<2x128xf32> to vector<2x32xf32>
    %163 = vector.extract_strided_slice %160 {offsets = [0, 32], sizes = [2, 32], strides = [1, 1]} : vector<2x128xf32> to vector<2x32xf32>
    %164 = vector.extract_strided_slice %161 {offsets = [0, 64], sizes = [2, 32], strides = [1, 1]} : vector<2x128xf32> to vector<2x32xf32>
    %165 = vector.extract_strided_slice %160 {offsets = [0, 96], sizes = [2, 32], strides = [1, 1]} : vector<2x128xf32> to vector<2x32xf32>
    %166 = arith.mulf %163, %150 : vector<2x32xf32>
    %167 = arith.mulf %162, %164 : vector<2x32xf32>
    %168 = arith.addf %166, %167 : vector<2x32xf32>
    %169 = math.tanh %168 : vector<2x32xf32>
    %170 = arith.mulf %165, %169 : vector<2x32xf32>
    %171 = arith.truncf %170 : vector<2x32xf32> to vector<2x32xbf16>
    %cst_55 = arith.constant dense<0.000000e+00> : vector<2x128xf32>
    %172 = tpu.matmul %171, %4, %cst_55 {dimension_numbers = #tpu.dot_dimension_numbers<[1], [0], [0], [1], [0, 0, 1, 1], [], []>} : vector<2x32xbf16>, vector<32x128xbf16>, vector<2x128xf32> -> vector<2x128xf32>
    %173 = arith.addf %53, %172 : vector<2x128xf32>
    %174 = arith.negf %173 : vector<2x128xf32>
    %175 = math.exp %174 : vector<2x128xf32>
    %cst_56 = arith.constant 1.000000e+00 : f32
    %176 = vector.broadcast %cst_56 : f32 to vector<2x128xf32>
    %177 = arith.addf %176, %175 : vector<2x128xf32>
    %178 = arith.divf %176, %177 : vector<2x128xf32>
    %179 = math.tanh %173 : vector<2x128xf32>
    %180 = vector.extract_strided_slice %178 {offsets = [0, 0], sizes = [2, 32], strides = [1, 1]} : vector<2x128xf32> to vector<2x32xf32>
    %181 = vector.extract_strided_slice %178 {offsets = [0, 32], sizes = [2, 32], strides = [1, 1]} : vector<2x128xf32> to vector<2x32xf32>
    %182 = vector.extract_strided_slice %179 {offsets = [0, 64], sizes = [2, 32], strides = [1, 1]} : vector<2x128xf32> to vector<2x32xf32>
    %183 = vector.extract_strided_slice %178 {offsets = [0, 96], sizes = [2, 32], strides = [1, 1]} : vector<2x128xf32> to vector<2x32xf32>
    %184 = arith.mulf %181, %168 : vector<2x32xf32>
    %185 = arith.mulf %180, %182 : vector<2x32xf32>
    %186 = arith.addf %184, %185 : vector<2x32xf32>
    %187 = math.tanh %186 : vector<2x32xf32>
    %188 = arith.mulf %183, %187 : vector<2x32xf32>
    %189 = arith.truncf %188 : vector<2x32xf32> to vector<2x32xbf16>
    %cst_57 = arith.constant dense<0.000000e+00> : vector<2x128xf32>
    %190 = tpu.matmul %189, %4, %cst_57 {dimension_numbers = #tpu.dot_dimension_numbers<[1], [0], [0], [1], [0, 0, 1, 1], [], []>} : vector<2x32xbf16>, vector<32x128xbf16>, vector<2x128xf32> -> vector<2x128xf32>
    %191 = arith.addf %60, %190 : vector<2x128xf32>
    %192 = arith.negf %191 : vector<2x128xf32>
    %193 = math.exp %192 : vector<2x128xf32>
    %cst_58 = arith.constant 1.000000e+00 : f32
    %194 = vector.broadcast %cst_58 : f32 to vector<2x128xf32>
    %195 = arith.addf %194, %193 : vector<2x128xf32>
    %196 = arith.divf %194, %195 : vector<2x128xf32>
    %197 = math.tanh %191 : vector<2x128xf32>
    %198 = vector.extract_strided_slice %196 {offsets = [0, 0], sizes = [2, 32], strides = [1, 1]} : vector<2x128xf32> to vector<2x32xf32>
    %199 = vector.extract_strided_slice %196 {offsets = [0, 32], sizes = [2, 32], strides = [1, 1]} : vector<2x128xf32> to vector<2x32xf32>
    %200 = vector.extract_strided_slice %197 {offsets = [0, 64], sizes = [2, 32], strides = [1, 1]} : vector<2x128xf32> to vector<2x32xf32>
    %201 = vector.extract_strided_slice %196 {offsets = [0, 96], sizes = [2, 32], strides = [1, 1]} : vector<2x128xf32> to vector<2x32xf32>
    %202 = arith.mulf %199, %186 : vector<2x32xf32>
    %203 = arith.mulf %198, %200 : vector<2x32xf32>
    %204 = arith.addf %202, %203 : vector<2x32xf32>
    %205 = math.tanh %204 : vector<2x32xf32>
    %206 = arith.mulf %201, %205 : vector<2x32xf32>
    %c0_i32_59 = arith.constant 0 : i32
    %207 = tpu.memref_slice %arg10[%c0_i32_59] : memref<2x!tpu.dma_semaphore, #tpu.memory_space<semaphore_mem>> -> memref<1x!tpu.dma_semaphore, #tpu.memory_space<semaphore_mem>>
    %208 = tpu.memref_squeeze %207 : memref<1x!tpu.dma_semaphore, #tpu.memory_space<semaphore_mem>> -> memref<!tpu.dma_semaphore, #tpu.memory_space<semaphore_mem>>
    tpu.wait_dma2 semaphore(%208 : memref<!tpu.dma_semaphore, #tpu.memory_space<semaphore_mem>>) src(%arg5 : memref<32x512xbf16, #tpu.memory_space<any>>) dst(%arg8 : memref<32x512xbf16, #tpu.memory_space<vmem>>)
    %c1_i32_60 = arith.constant 1 : i32
    %209 = tpu.memref_slice %arg10[%c1_i32_60] : memref<2x!tpu.dma_semaphore, #tpu.memory_space<semaphore_mem>> -> memref<1x!tpu.dma_semaphore, #tpu.memory_space<semaphore_mem>>
    %210 = tpu.memref_squeeze %209 : memref<1x!tpu.dma_semaphore, #tpu.memory_space<semaphore_mem>> -> memref<!tpu.dma_semaphore, #tpu.memory_space<semaphore_mem>>
    tpu.wait_dma2 semaphore(%210 : memref<!tpu.dma_semaphore, #tpu.memory_space<semaphore_mem>>) src(%arg6 : memref<512x128xbf16, #tpu.memory_space<any>>) dst(%arg9 : memref<512x128xbf16, #tpu.memory_space<vmem>>)
    %211 = arith.truncf %206 : vector<2x32xf32> to vector<2x32xbf16>
    %c0_61 = arith.constant 0 : index
    %c0_62 = arith.constant 0 : index
    %212 = vector.load %arg8[%c0_61, %c0_62] : memref<32x512xbf16, #tpu.memory_space<vmem>>, vector<32x512xbf16>
    %cst_63 = arith.constant dense<0.000000e+00> : vector<2x512xf32>
    %213 = tpu.matmul %211, %212, %cst_63 {dimension_numbers = #tpu.dot_dimension_numbers<[1], [0], [0], [1], [0, 0, 1, 1], [], []>} : vector<2x32xbf16>, vector<32x512xbf16>, vector<2x512xf32> -> vector<2x512xf32>
    %c0_64 = arith.constant 0 : index
    %c0_65 = arith.constant 0 : index
    %214 = vector.load %arg3[%c0_64, %c0_65] : memref<1x512xf32, #tpu.memory_space<vmem>>, vector<1x512xf32>
    %215 = vector.broadcast %214 : vector<1x512xf32> to vector<2x512xf32>
    %216 = arith.addf %213, %215 : vector<2x512xf32>
    %cst_66 = arith.constant 0.000000e+00 : f32
    %217 = vector.broadcast %cst_66 : f32 to vector<2x512xf32>
    %218 = arith.maximumf %216, %217 : vector<2x512xf32>
    %219 = arith.truncf %218 : vector<2x512xf32> to vector<2x512xbf16>
    %c0_67 = arith.constant 0 : index
    %c0_68 = arith.constant 0 : index
    %220 = vector.load %arg9[%c0_67, %c0_68] : memref<512x128xbf16, #tpu.memory_space<vmem>>, vector<512x128xbf16>
    %cst_69 = arith.constant dense<0.000000e+00> : vector<2x128xf32>
    %221 = tpu.matmul %219, %220, %cst_69 {dimension_numbers = #tpu.dot_dimension_numbers<[1], [0], [0], [1], [0, 0, 1, 1], [], []>} : vector<2x512xbf16>, vector<512x128xbf16>, vector<2x128xf32> -> vector<2x128xf32>
    %c0_70 = arith.constant 0 : index
    %c0_71 = arith.constant 0 : index
    %222 = vector.load %arg4[%c0_70, %c0_71] : memref<1x128xf32, #tpu.memory_space<vmem>>, vector<1x128xf32>
    %223 = vector.broadcast %222 : vector<1x128xf32> to vector<2x128xf32>
    %224 = arith.addf %221, %223 : vector<2x128xf32>
    %c0_72 = arith.constant 0 : index
    %c0_73 = arith.constant 0 : index
    %225 = vector.load %arg7[%c0_72, %c0_73] : memref<2x128xf32, #tpu.memory_space<vmem>>, vector<2x128xf32>
    tpu.vector_store %arg7[%c0_72, %c0_73], %224 {strides = array<i32>} : memref<2x128xf32, #tpu.memory_space<vmem>>, vector<2x128xf32>,
    return
  }
}

</mosaic_0001>

<bundles_post_ra>
// kernel: tpu_custom_call.1
= control target key start
LH: loop header
LB: loop body
LE: loop exit
PB: predicated region body
PF: predicated region fallthrough
CT: control target
= control target key end

     0   :  { %12 = vsyncpa [#allocation8], 0  ;;  %s1689_s0 = inlined_call_operand.hbm [shape: s32[2,8], index: 0, kind: input, shape index: {}]   ;;  %s1690_s1 = inlined_call_operand.hbm [shape: f32[50,128], index: 1, kind: input, shape index: {}]   ;;  %s1691_s2 = inlined_call_operand.hbm [shape: bf16[32,128], index: 2, kind: input, shape index: {}]   ;;  %s1692_s3 = inlined_call_operand.vmem [shape: f32[1,512], index: 3, kind: input, shape index: {}]   ;;  %s1693_s4 = inlined_call_operand.vmem [shape: f32[1,128], index: 4, kind: input, shape index: {}]   ;;  %s1694_s5 = inlined_call_operand.hbm [shape: bf16[32,512], index: 5, kind: input, shape index: {}]   ;;  %s1695_s6 = inlined_call_operand.hbm [shape: bf16[512,128], index: 6, kind: input, shape index: {}]   ;;  %s1696_s7 = inlined_call_operand.hbm [shape: f32[2,128], index: 7, kind: output, shape index: {}]  }
   0x1   :  { %13 = vsyncpa [#allocation6], 0 }
   0x2   :  { %14 = vsyncpa [#allocation11], 0 }
   0x3   :  { %15 = vsyncpa [#allocation7], 0  ;;  %s1337_s26 = scalar_lea.hbm %s1689_s0, 32 }
   0x4   :  { %p1338_p0 = scmp.ne.s32.totalorder %s1689_s0, %s1337_s26  ;;  %p1341_p1 = scmp.lt.u32.totalorder %s1337_s26, %s1689_s0 }
   0x6   :  { %p1343_p2 = pnand %p1341_p1, %p1338_p0 }
   0x8   :  { %1346 = shalt.err (!%p1343_p2)
}
   0x9   :  { %s1447_s8 = smov [#allocation5]   ;;  %s1448_s11 = smov [#allocation9]  }
   0xa   :  { %23 = dma.hbm_to_smem %s1689_s0, 32, %s1447_s8, [#allocation8]  }
   0xb   :  { %s29_s12 = sshll.u32 %s1448_s11, 4  ;;  %s1347_s15 = scalar_lea.hbm %s1690_s1, 896  ;;  %s30_s12 = int_to_ptr.vmem [resolvable:$true] %s29_s12 }
   0xc   :  { %p1348_p3 = scmp.ne.s32.totalorder %s1690_s1, %s1347_s15  ;;  %p1351_p4 = scmp.lt.u32.totalorder %s1347_s15, %s1690_s1 }
   0xe   :  { %p1353_p5 = pnand %p1351_p4, %p1348_p3 }
  0x10   :  { %1356 = shalt.err (!%p1353_p5)
}
  0x11   :  { %s1357_s20 = scalar_lea.vmem %s30_s12, 896  ;;  %p1362_p7 = scmp.lt.s32.totalorder %s30_s12, %s30_s12 }
  0x12   :  { %p1358_p6 = scmp.ne.s32.totalorder %s30_s12, %s1357_s20  ;;  %p1363_p8 = scmp.lt.s32.totalorder %s1357_s20, %s1357_s20 }
  0x14   :  { %p1364_p9 = por %p1363_p8, %p1362_p7 }
  0x16   :  { %p1365_p10 = pnand %p1364_p9, %p1358_p6 }
  0x18   :  { %1368 = shalt.err (!%p1365_p10)
}
  0x19   :  { %s1449_s0 = smov 128   ;;  %s1450_s21 = smov 8  }
  0x1a   :  { %35 = dma.hbm_to_vmem [thread:$0]  %s1690_s1, 896, %s30_s12, [#allocation6], %s1449_s0, %s1449_s0, %s1450_s21  }
  0x1b   :  { %s1451_s24 = smov [#allocation10]   ;;  %s1369_s28 = scalar_lea.hbm %s1691_s2, 256 }
  0x1c   :  { %s41_s25 = sshll.u32 %s1451_s24, 4  ;;  %p1370_p11 = scmp.ne.s32.totalorder %s1691_s2, %s1369_s28  ;;  %s42_s25 = int_to_ptr.vmem [resolvable:$true] %s41_s25 }
  0x1d   :  { %p1373_p12 = scmp.lt.u32.totalorder %s1369_s28, %s1691_s2 }
  0x1f   :  { %p1375_p13 = pnand %p1373_p12, %p1370_p11 }
  0x21   :  { %1378 = shalt.err (!%p1375_p13)
}
  0x22   :  { %s1379_s10 = scalar_lea.vmem %s42_s25, 256  ;;  %p1384_p1 = scmp.lt.s32.totalorder %s42_s25, %s42_s25 }
  0x23   :  { %p1380_p0 = scmp.ne.s32.totalorder %s42_s25, %s1379_s10  ;;  %p1385_p2 = scmp.lt.s32.totalorder %s1379_s10, %s1379_s10 }
  0x25   :  { %p1386_p3 = por %p1385_p2, %p1384_p1 }
  0x27   :  { %p1387_p4 = pnand %p1386_p3, %p1380_p0 }
  0x29   :  { %1390 = shalt.err (!%p1387_p4)
}
  0x2a   :  { %s1452_s1 = smov 64   ;;  %s1453_s11 = smov 4  }
  0x2b   :  { %47 = dma.hbm_to_vmem [thread:$0]  %s1691_s2, 256, %s42_s25, [#allocation11], %s1452_s1, %s1452_s1, %s1453_s11  }
  0x2c   :  { %1435 = dma.done.wait [#allocation8], 32  }
  0x2d   :  { %1436 = vsyncadd [#allocation8], 4294967264 }
  0x2e   :  { %1437 = dma.done.wait [#allocation6], 896  }
  0x2f   :  { %1438 = vsyncadd [#allocation6], 4294966400 }
  0x30   :  { %1439 = dma.done.wait [#allocation11], 256  }
  0x31   :  { %1440 = vsyncadd [#allocation11], 4294967040 }
  0x32   :  { %61 = sfence }
  0x33   :  { %s67_s14 = sld [smem:[#allocation0]]   ;;  %s1454_s15 = smov [#allocation2]   ;;  %v1455_v0 = vmov 0.0   ;;  %vm1456_vm0 = vmmov 0   ;;  %v1462_v3 = vmov 0   ;;  %vm123_vm1 = vcmask 1040384  }
  0x34   :  { %s75_s16 = sshll.u32 %s1454_s15, 4  ;;  %1188 = vmatprep.subr.bf16.mxu0 %v1455_v0  ;;  %1192 = vmatprep.mubr.msk.bf16.mxu0 %vm1456_vm0, %v1455_v0  ;;  %s1457_s17 = smov 512   ;;  %vm207_vm2 = vcmask 261120   ;;  %s76_s16 = int_to_ptr.vmem [resolvable:$true] %s75_s16 }
  0x35   :  { %79 = sst [smem:[#allocation14]] %s1457_s17  ;;  %1196 = vmatprep.subr.bf16.mxu1 %v1455_v0  ;;  %1200 = vmatprep.mubr.msk.bf16.mxu1 %vm1456_vm0, %v1455_v0  ;;  %s1458_s19 = smov 2  }
  0x36   :  { %81 = sst [smem:[#allocation14 + $0x1]] %s1457_s17  ;;  %s1459_s20 = smov 256  }
  0x37   :  { %83 = sst [smem:[#allocation14 + $0x2]] %s1453_s11  ;;  %s1460_s21 = smov [#allocation4]  }
  0x38   :  { %85 = sst [smem:[#allocation14 + $0x3]] %s1452_s1  ;;  %s1461_s22 = smov [#allocation13]  }
  0x39   :  { %s1081_s2 = sshll.u32 %s67_s14, 26  ;;  %87 = sst [smem:[#allocation14 + $0x4]] %s1449_s0 }
  0x3a   :  { %s1082_s18 = sadd.s32 134217728, %s1081_s2  ;;  %89 = sst [smem:[#allocation14 + $0x5]] %s1458_s19 }
  0x3b   :  { %91 = sst [smem:[#allocation14 + $0x6]] %s1459_s20  ;;  %s1463_s27 = smov 32  }
  0x3c   :  { %93 = sst [smem:[#allocation14 + $0x7]] %s1452_s1 }
  0x3d   :  { %95 = sst [smem:[#allocation14 + $0x8]] %s1453_s11 }
  0x3e   :  { %97 = dma.general %s1694_s5, 1024, %s76_s16, %s1460_s21, %s1461_s22, [#allocation14], %s1082_s18, 0  }
  0x3f   :  { %v1561_v1 = vld [vmem:[#allocation10] sm:$0xff]   ;;  %v1564_v2 = vld [vmem:[#allocation10 + $0x8] sm:$0xff]   ;;  %s1083_s5 = sld [smem:[#allocation5 + $0x80]]  ;;  %s1085_s28 = sld [smem:[#allocation5 + $0x81]] }
  0x40   :  { %1189 = vmatpush3.bf16.msra.mxu0 %v1561_v1  ;;  %1197 = vmatpush3.bf16.msra.mxu1 %v1561_v1  ;;  %s114_s0 = sld [smem:[#allocation5]]  ;;  %s1084_s29 = sld [smem:[#allocation5 + $0x1]] }
  0x41   :  { %1190 = vmatprep.subr.bf16.mxu0 %v1455_v0  ;;  %1198 = vmatprep.subr.bf16.mxu1 %v1455_v0  ;;  %s1087_s9 = sld [smem:[#allocation5 + $0x82]]  ;;  %s1089_s13 = sld [smem:[#allocation5 + $0x83]] }
  0x42   :  { %s1086_s10 = sld [smem:[#allocation5 + $0x2]]  ;;  %s1088_s14 = sld [smem:[#allocation5 + $0x3]] }
  0x43   :  { %s1091_s17 = sld [smem:[#allocation5 + $0x84]]  ;;  %s1093_s20 = sld [smem:[#allocation5 + $0x85]] }
  0x44   :  { %1191 = vmatpush3.bf16.msra.mxu0 %v1564_v2  ;;  %1199 = vmatpush3.bf16.msra.mxu1 %v1564_v2  ;;  %s1090_s2 = sld [smem:[#allocation5 + $0x4]]  ;;  %s1092_s21 = sld [smem:[#allocation5 + $0x5]] }
  0x45   :  { %1204 = vmatprep.subr.bf16.mxu0 %v1455_v0  ;;  %1212 = vmatprep.subr.bf16.mxu1 %v1455_v0  ;;  %s118_s25 = scalar_lea.vmem [#allocation9], %s1083_s5  ;;  %s129_s30 = scalar_lea.vmem [#allocation9], %s1085_s28 }
  0x46   :  { %v119_v4 = vld [vmem:[%s118_s25] sm:$0x1]  ;;  %s115_s26 = scalar_lea.vmem [#allocation9], %s114_s0  ;;  %s126_s8 = scalar_lea.vmem [#allocation9], %s1084_s29 }
  0x47   :  { %1193 = vmatmul.mubr.bf16.vlgmr.msra.gmra.mrb[0].mxu0 %v1462_v3  ;;  %v121_v5 = vrot.slane %v119_v4, 7  ;;  %v116_v6 = vld [vmem:[%s115_s26] sm:$0x1]  ;;  %s139_s11 = scalar_lea.vmem [#allocation9], %s1087_s9  ;;  %s149_s15 = scalar_lea.vmem [#allocation9], %s1089_s13 }
  0x48   :  { %1205 = vmatpush3.bf16.msra.mxu0 %v1561_v1  ;;  %1208 = vmatprep.mubr.msk.bf16.mxu0 %vm1456_vm0, %v1455_v0  ;;  %v130_v28 = vld [vmem:[%s129_s30] sm:$0x1]  ;;  %s136_s12 = scalar_lea.vmem [#allocation9], %s1086_s10  ;;  %s146_s16 = scalar_lea.vmem [#allocation9], %s1088_s14 }
  0x49   :  { %1206 = vmatprep.subr.bf16.mxu0 %v1455_v0  ;;  %v124_v7 = vsel %vm123_vm1, %v116_v6, %v121_v5  ;;  %v132_v29 = vrot.slane %v130_v28, 7  ;;  %v127_v30 = vld [vmem:[%s126_s8] sm:$0x1]  ;;  %s159_s18 = scalar_lea.vmem [#allocation9], %s1091_s17  ;;  %s169_s22 = scalar_lea.vmem [#allocation9], %s1093_s20 }
  0x4a   :  { %v140_v52 = vld [vmem:[%s139_s11] sm:$0x1]  ;;  %s156_s19 = scalar_lea.vmem [#allocation9], %s1090_s2  ;;  %s166_s23 = scalar_lea.vmem [#allocation9], %s1092_s21 }
  0x4b   :  { %v134_v31 = vsel %vm123_vm1, %v127_v30, %v132_v29  ;;  %v142_v53 = vrot.slane %v140_v52, 7  ;;  %v137_v54 = vld [vmem:[%s136_s12] sm:$0x1]  ;;  %s1095_s24 = sld [smem:[#allocation5 + $0x86]]  ;;  %s1097_s26 = sld [smem:[#allocation5 + $0x87]] }
  0x4c   :  { %1207 = vmatpush3.bf16.msra.mxu0 %v1564_v2  ;;  %s1094_s5 = sld [smem:[#allocation5 + $0x6]]  ;;  %s1096_s28 = sld [smem:[#allocation5 + $0x7]] }
  0x4d   :  { %1220 = vmatprep.subr.bf16.mxu0 %v1455_v0  ;;  %v144_v55 = vsel %vm123_vm1, %v137_v54, %v142_v53  ;;  %s1464_s8 = smov [#allocation3]   ;;  %s1391_s12 = scalar_lea.hbm %s1695_s6, 4096 }
  0x4e   :  { %s106_s9 = sshll.u32 %s1464_s8, 4  ;;  %p1392_p5 = scmp.ne.s32.totalorder %s1695_s6, %s1391_s12  ;;  %s107_s9 = int_to_ptr.vmem [resolvable:$true] %s106_s9 }
  0x4f   :  { %p1395_p6 = scmp.lt.u32.totalorder %s1391_s12, %s1695_s6 }
  0x51   :  { %s179_s0 = scalar_lea.vmem [#allocation9], %s1095_s24  ;;  %s189_s29 = scalar_lea.vmem [#allocation9], %s1097_s26 }
  0x52   :  { %s176_s25 = scalar_lea.vmem [#allocation9], %s1094_s5  ;;  %s186_s30 = scalar_lea.vmem [#allocation9], %s1096_s28 }
  0x53   :  { %p1397_p7 = pnand %p1395_p6, %p1392_p5 }
 0x11a   :  { %v245_v8 = vpop.f32.mrb[0].mxu0 }
 0x11b   :  { %v251_v9 = vadd.f32 %v245_v8, %v124_v7  ;;  %v1194_v10 = vpop.f32.mrb[1].mxu0 }
 0x11c   :  { %v248_v11 = vpop.f32.mrb[2].mxu0 }
 0x11d   :  { %v1195_v12 = vpop.f32.mrb[3].mxu0  ;;  %1273 = vtanh.f32 %v251_v9  ;;  %v1100_v14 = vmul.f32 -1.442695, %v251_v9 }
 0x11f   :  { %1275 = vpow2.f32 %v1100_v14 }
 0x127   :  { %v1274_v13 = vpop.eup %1273 }
 0x128   :  { %261 = vrot.lane.b32.xlu0 %v1274_v13, %s1452_s1 }
 0x129   :  { %v1276_v15 = vpop.eup %1275 }
 0x12a   :  { %v255_v16 = vadd.f32 1.0, %v1276_v15 }
 0x12c   :  { %1277 = vrcp.f32 %v255_v16  ;;  %v150_v16 = vld [vmem:[%s149_s15] sm:$0x1] }
 0x136   :  { %v1278_v17 = vpop.eup %1277 }
 0x137   :  { %v259_v20 = vmul.f32 0.0, %v1278_v17 }
 0x19a   :  { %v262_v18 = vpop.permute.xlu0 %261 }
 0x19b   :  { %v264_v19 = vmul.f32 %v1278_v17, %v262_v18  ;;  %v147_v18 = vld [vmem:[%s146_s16] sm:$0x1] }
 0x19d   :  { %266 = vrot.lane.b32.xlu0 %v264_v19, %s1463_s27 }
 0x20f   :  { %v267_v21 = vpop.permute.xlu0 %266 }
 0x210   :  { %v269_v22 = vadd.f32 %v267_v21, %v259_v20 }
 0x212   :  { %1279 = vtanh.f32 %v269_v22 }
 0x21c   :  { %v1280_v23 = vpop.eup %1279 }
 0x21d   :  { %272 = vrot.lane.b32.xlu1 %v1280_v23, %s1452_s1 }
 0x28f   :  { %v273_v24 = vpop.permute.xlu1 %272 }
 0x290   :  { %v275_v25 = vmul.f32 %v1278_v17, %v273_v24  ;;  %v152_v17 = vrot.slane %v150_v16, 7 }
 0x292   :  { %v276_v26 = vpack.c.bf16 %v275_v25, %v275_v25  ;;  %v154_v19 = vsel %vm123_vm1, %v147_v18, %v152_v17 }
 0x294   :  { %278 = vrot.lane.b32.xlu1 %v276_v26, %s1463_s27 }
 0x306   :  { %v279_v27 = vpop.permute.xlu1 %278 }
 0x307   :  { %1201 = vmatmul.mubr.msk.bf16.vlgmr.msra.gmra.mrb[0].mxu1 %vm207_vm2, %v279_v27 }
 0x308   :  { %1213 = vmatpush3.bf16.msra.mxu1 %v1561_v1  ;;  %1216 = vmatprep.mubr.msk.bf16.mxu1 %vm1456_vm0, %v1455_v0 }
 0x309   :  { %1214 = vmatprep.subr.bf16.mxu1 %v1455_v0 }
 0x30c   :  { %1215 = vmatpush3.bf16.msra.mxu1 %v1564_v2 }
 0x30d   :  { %1228 = vmatprep.subr.bf16.mxu1 %v1455_v0 }
 0x3da   :  { %v317_v32 = vpop.f32.mrb[0].mxu1 }
 0x3db   :  { %v323_v33 = vadd.f32 %v317_v32, %v134_v31  ;;  %v1202_v34 = vpop.f32.mrb[1].mxu1 }
 0x3dc   :  { %v320_v35 = vpop.f32.mrb[2].mxu1 }
 0x3dd   :  { %1281 = vtanh.f32 %v323_v33  ;;  %v1203_v36 = vpop.f32.mrb[3].mxu1  ;;  %v1102_v38 = vmul.f32 -1.442695, %v323_v33 }
 0x3df   :  { %1283 = vpow2.f32 %v1102_v38 }
 0x3e7   :  { %v1282_v37 = vpop.eup %1281 }
 0x3e8   :  { %333 = vrot.lane.b32.xlu0 %v1282_v37, %s1452_s1 }
 0x3e9   :  { %v1284_v39 = vpop.eup %1283 }
 0x3ea   :  { %v327_v40 = vadd.f32 1.0, %v1284_v39 }
 0x3ec   :  { %1285 = vrcp.f32 %v327_v40  ;;  %v160_v40 = vld [vmem:[%s159_s18] sm:$0x1] }
 0x3f6   :  { %v1286_v41 = vpop.eup %1285 }
 0x3f7   :  { %v331_v44 = vmul.f32 %v1286_v41, %v269_v22 }
 0x45a   :  { %v334_v42 = vpop.permute.xlu0 %333 }
 0x45b   :  { %v336_v43 = vmul.f32 %v1286_v41, %v334_v42  ;;  %v157_v42 = vld [vmem:[%s156_s19] sm:$0x1] }
 0x45d   :  { %338 = vrot.lane.b32.xlu1 %v336_v43, %s1463_s27 }
 0x4cf   :  { %v339_v45 = vpop.permute.xlu1 %338 }
 0x4d0   :  { %v341_v46 = vadd.f32 %v339_v45, %v331_v44 }
 0x4d2   :  { %1287 = vtanh.f32 %v341_v46 }
 0x4dc   :  { %v1288_v47 = vpop.eup %1287 }
 0x4dd   :  { %344 = vrot.lane.b32.xlu0 %v1288_v47, %s1452_s1 }
 0x54f   :  { %v345_v48 = vpop.permute.xlu0 %344 }
 0x550   :  { %v347_v49 = vmul.f32 %v1286_v41, %v345_v48  ;;  %v162_v41 = vrot.slane %v160_v40, 7 }
 0x552   :  { %v348_v50 = vpack.c.bf16 %v347_v49, %v347_v49  ;;  %v164_v43 = vsel %vm123_vm1, %v157_v42, %v162_v41 }
 0x554   :  { %350 = vrot.lane.b32.xlu1 %v348_v50, %s1463_s27 }
 0x5c6   :  { %v351_v51 = vpop.permute.xlu1 %350 }
 0x5c7   :  { %1209 = vmatmul.mubr.msk.bf16.vlgmr.msra.gmra.mrb[4].mxu0 %vm207_vm2, %v351_v51 }
 0x5c8   :  { %1221 = vmatpush3.bf16.msra.mxu0 %v1561_v1  ;;  %1224 = vmatprep.mubr.msk.bf16.mxu0 %vm1456_vm0, %v1455_v0 }
 0x5c9   :  { %1222 = vmatprep.subr.bf16.mxu0 %v1455_v0 }
 0x5cc   :  { %1223 = vmatpush3.bf16.msra.mxu0 %v1564_v2 }
 0x5cd   :  { %1236 = vmatprep.subr.bf16.mxu0 %v1455_v0 }
 0x69a   :  { %v389_v56 = vpop.f32.mrb[4].mxu0 }
 0x69b   :  { %v395_v57 = vadd.f32 %v389_v56, %v144_v55  ;;  %v1210_v58 = vpop.f32.mrb[5].mxu0 }
 0x69c   :  { %v392_v59 = vpop.f32.mrb[6].mxu0 }
 0x69d   :  { %1289 = vtanh.f32 %v395_v57  ;;  %v1211_v60 = vpop.f32.mrb[7].mxu0  ;;  %v1104_v62 = vmul.f32 -1.442695, %v395_v57 }
 0x69f   :  { %1291 = vpow2.f32 %v1104_v62 }
 0x6a7   :  { %v1290_v61 = vpop.eup %1289 }
 0x6a8   :  { %405 = vrot.lane.b32.xlu0 %v1290_v61, %s1452_s1 }
 0x6a9   :  { %v1292_v63 = vpop.eup %1291 }
 0x6aa   :  { %v399_v4 = vadd.f32 1.0, %v1292_v63 }
 0x6ac   :  { %1293 = vrcp.f32 %v399_v4  ;;  %v170_v4 = vld [vmem:[%s169_s22] sm:$0x1] }
 0x6b6   :  { %v1294_v5 = vpop.eup %1293 }
 0x6b7   :  { %v403_v8 = vmul.f32 %v1294_v5, %v341_v46 }
 0x71a   :  { %v406_v6 = vpop.permute.xlu0 %405 }
 0x71b   :  { %v408_v7 = vmul.f32 %v1294_v5, %v406_v6  ;;  %v167_v6 = vld [vmem:[%s166_s23] sm:$0x1] }
 0x71d   :  { %410 = vrot.lane.b32.xlu1 %v408_v7, %s1463_s27 }
 0x78f   :  { %v411_v9 = vpop.permute.xlu1 %410 }
 0x790   :  { %v413_v10 = vadd.f32 %v411_v9, %v403_v8 }
 0x792   :  { %1295 = vtanh.f32 %v413_v10 }
 0x79c   :  { %v1296_v11 = vpop.eup %1295 }
 0x79d   :  { %416 = vrot.lane.b32.xlu0 %v1296_v11, %s1452_s1 }
 0x80f   :  { %v417_v12 = vpop.permute.xlu0 %416 }
 0x810   :  { %v419_v13 = vmul.f32 %v1294_v5, %v417_v12  ;;  %v172_v5 = vrot.slane %v170_v4, 7 }
 0x812   :  { %v420_v14 = vpack.c.bf16 %v419_v13, %v419_v13  ;;  %v174_v7 = vsel %vm123_vm1, %v167_v6, %v172_v5 }
 0x814   :  { %422 = vrot.lane.b32.xlu1 %v420_v14, %s1463_s27 }
 0x886   :  { %v423_v15 = vpop.permute.xlu1 %422 }
 0x887   :  { %1217 = vmatmul.mubr.msk.bf16.vlgmr.msra.gmra.mrb[4].mxu1 %vm207_vm2, %v423_v15 }
 0x888   :  { %1229 = vmatpush3.bf16.msra.mxu1 %v1561_v1  ;;  %1232 = vmatprep.mubr.msk.bf16.mxu1 %vm1456_vm0, %v1455_v0 }
 0x889   :  { %1230 = vmatprep.subr.bf16.mxu1 %v1455_v0 }
 0x88c   :  { %1231 = vmatpush3.bf16.msra.mxu1 %v1564_v2 }
 0x88d   :  { %1244 = vmatprep.subr.bf16.mxu1 %v1455_v0 }
 0x95a   :  { %v461_v20 = vpop.f32.mrb[4].mxu1 }
 0x95b   :  { %v467_v21 = vadd.f32 %v461_v20, %v154_v19  ;;  %v1218_v22 = vpop.f32.mrb[5].mxu1 }
 0x95c   :  { %v464_v23 = vpop.f32.mrb[6].mxu1 }
 0x95d   :  { %1297 = vtanh.f32 %v467_v21  ;;  %v1219_v24 = vpop.f32.mrb[7].mxu1  ;;  %v1106_v26 = vmul.f32 -1.442695, %v467_v21 }
 0x95f   :  { %1299 = vpow2.f32 %v1106_v26 }
 0x967   :  { %v1298_v25 = vpop.eup %1297 }
 0x968   :  { %477 = vrot.lane.b32.xlu0 %v1298_v25, %s1452_s1  ;;  %v180_v25 = vld [vmem:[%s179_s0] sm:$0x1] }
 0x969   :  { %v1300_v27 = vpop.eup %1299  ;;  %v182_v26 = vrot.slane %v180_v25, 7 }
 0x96a   :  { %v471_v28 = vadd.f32 1.0, %v1300_v27  ;;  %v177_v27 = vld [vmem:[%s176_s25] sm:$0x1] }
 0x96c   :  { %1301 = vrcp.f32 %v471_v28  ;;  %v184_v28 = vsel %vm123_vm1, %v177_v27, %v182_v26 }
 0x976   :  { %v1302_v29 = vpop.eup %1301 }
 0x977   :  { %v475_v32 = vmul.f32 %v1302_v29, %v413_v10 }
 0x9da   :  { %v478_v30 = vpop.permute.xlu0 %477 }
 0x9db   :  { %v480_v31 = vmul.f32 %v1302_v29, %v478_v30 }
 0x9dd   :  { %482 = vrot.lane.b32.xlu1 %v480_v31, %s1463_s27 }
 0xa4f   :  { %v483_v33 = vpop.permute.xlu1 %482 }
 0xa50   :  { %v485_v34 = vadd.f32 %v483_v33, %v475_v32 }
 0xa52   :  { %1303 = vtanh.f32 %v485_v34 }
 0xa5c   :  { %v1304_v35 = vpop.eup %1303 }
 0xa5d   :  { %488 = vrot.lane.b32.xlu0 %v1304_v35, %s1452_s1 }
 0xacf   :  { %v489_v36 = vpop.permute.xlu0 %488 }
 0xad0   :  { %v491_v37 = vmul.f32 %v1302_v29, %v489_v36 }
 0xad2   :  { %v492_v38 = vpack.c.bf16 %v491_v37, %v491_v37 }
 0xad4   :  { %494 = vrot.lane.b32.xlu1 %v492_v38, %s1463_s27 }
 0xb46   :  { %v495_v39 = vpop.permute.xlu1 %494 }
 0xb47   :  { %1225 = vmatmul.mubr.msk.bf16.vlgmr.msra.gmra.mrb[8].mxu0 %vm207_vm2, %v495_v39 }
 0xb48   :  { %1237 = vmatpush3.bf16.msra.mxu0 %v1561_v1  ;;  %1240 = vmatprep.mubr.msk.bf16.mxu0 %vm1456_vm0, %v1455_v0 }
 0xb49   :  { %1238 = vmatprep.subr.bf16.mxu0 %v1455_v0 }
 0xb4c   :  { %1239 = vmatpush3.bf16.msra.mxu0 %v1564_v2 }
 0xc1a   :  { %v533_v44 = vpop.f32.mrb[8].mxu0 }
 0xc1b   :  { %v539_v45 = vadd.f32 %v533_v44, %v164_v43  ;;  %v1226_v46 = vpop.f32.mrb[9].mxu0 }
 0xc1c   :  { %v536_v47 = vpop.f32.mrb[10].mxu0 }
 0xc1d   :  { %1305 = vtanh.f32 %v539_v45  ;;  %v1227_v48 = vpop.f32.mrb[11].mxu0  ;;  %v1108_v50 = vmul.f32 -1.442695, %v539_v45 }
 0xc1f   :  { %1307 = vpow2.f32 %v1108_v50 }
 0xc27   :  { %v1306_v49 = vpop.eup %1305 }
 0xc28   :  { %549 = vrot.lane.b32.xlu0 %v1306_v49, %s1452_s1  ;;  %v190_v49 = vld [vmem:[%s189_s29] sm:$0x1] }
 0xc29   :  { %v1308_v51 = vpop.eup %1307  ;;  %v192_v50 = vrot.slane %v190_v49, 7 }
 0xc2a   :  { %v543_v52 = vadd.f32 1.0, %v1308_v51  ;;  %v187_v51 = vld [vmem:[%s186_s30] sm:$0x1] }
 0xc2c   :  { %1309 = vrcp.f32 %v543_v52  ;;  %v194_v52 = vsel %vm123_vm1, %v187_v51, %v192_v50 }
 0xc36   :  { %v1310_v53 = vpop.eup %1309 }
 0xc37   :  { %v547_v56 = vmul.f32 %v1310_v53, %v485_v34 }
 0xc9a   :  { %v550_v54 = vpop.permute.xlu0 %549 }
 0xc9b   :  { %v552_v55 = vmul.f32 %v1310_v53, %v550_v54 }
 0xc9d   :  { %554 = vrot.lane.b32.xlu1 %v552_v55, %s1463_s27 }
 0xd0f   :  { %v555_v57 = vpop.permute.xlu1 %554 }
 0xd10   :  { %v557_v58 = vadd.f32 %v555_v57, %v547_v56 }
 0xd12   :  { %1311 = vtanh.f32 %v557_v58 }
 0xd1c   :  { %v1312_v59 = vpop.eup %1311 }
 0xd1d   :  { %560 = vrot.lane.b32.xlu0 %v1312_v59, %s1452_s1 }
 0xd8f   :  { %v561_v60 = vpop.permute.xlu0 %560 }
 0xd90   :  { %v563_v61 = vmul.f32 %v1310_v53, %v561_v60 }
 0xd92   :  { %v564_v62 = vpack.c.bf16 %v563_v61, %v563_v61 }
 0xd94   :  { %566 = vrot.lane.b32.xlu1 %v564_v62, %s1463_s27 }
 0xe06   :  { %v567_v63 = vpop.permute.xlu1 %566 }
 0xe07   :  { %1233 = vmatmul.mubr.msk.bf16.vlgmr.msra.gmra.mrb[8].mxu1 %vm207_vm2, %v567_v63 }
 0xe08   :  { %1245 = vmatpush3.bf16.msra.mxu1 %v1561_v1  ;;  %1248 = vmatprep.mubr.msk.bf16.mxu1 %vm1456_vm0, %v1455_v0 }
 0xe09   :  { %1246 = vmatprep.subr.bf16.mxu1 %v1455_v0 }
 0xe0c   :  { %1247 = vmatpush3.bf16.msra.mxu1 %v1564_v2 }
 0xeda   :  { %v605_v8 = vpop.f32.mrb[8].mxu1 }
 0xedb   :  { %v611_v9 = vadd.f32 %v605_v8, %v174_v7  ;;  %v1234_v10 = vpop.f32.mrb[9].mxu1 }
 0xedc   :  { %v608_v1 = vpop.f32.mrb[10].mxu1 }
 0xedd   :  { %1313 = vtanh.f32 %v611_v9  ;;  %v1235_v11 = vpop.f32.mrb[11].mxu1  ;;  %v1110_v0 = vmul.f32 -1.442695, %v611_v9 }
 0xedf   :  { %1315 = vpow2.f32 %v1110_v0 }
 0xee7   :  { %v1314_v12 = vpop.eup %1313 }
 0xee8   :  { %621 = vrot.lane.b32.xlu0 %v1314_v12, %s1452_s1 }
 0xee9   :  { %v1316_v2 = vpop.eup %1315 }
 0xeea   :  { %v615_v13 = vadd.f32 1.0, %v1316_v2 }
 0xeec   :  { %1317 = vrcp.f32 %v615_v13 }
 0xef6   :  { %v1318_v14 = vpop.eup %1317 }
 0xef7   :  { %v619_v17 = vmul.f32 %v1318_v14, %v557_v58 }
 0xf5a   :  { %v622_v15 = vpop.permute.xlu0 %621 }
 0xf5b   :  { %v624_v16 = vmul.f32 %v1318_v14, %v622_v15 }
 0xf5d   :  { %626 = vrot.lane.b32.xlu1 %v624_v16, %s1463_s27 }
 0xfcf   :  { %v627_v18 = vpop.permute.xlu1 %626 }
 0xfd0   :  { %v629_v19 = vadd.f32 %v627_v18, %v619_v17 }
 0xfd2   :  { %1319 = vtanh.f32 %v629_v19 }
 0xfdc   :  { %v1320_v20 = vpop.eup %1319 }
 0xfdd   :  { %632 = vrot.lane.b32.xlu0 %v1320_v20, %s1452_s1 }
0x104f   :  { %v633_v21 = vpop.permute.xlu0 %632 }
0x1050   :  { %v635_v22 = vmul.f32 %v1318_v14, %v633_v21 }
0x1052   :  { %v636_v23 = vpack.c.bf16 %v635_v22, %v635_v22 }
0x1054   :  { %638 = vrot.lane.b32.xlu1 %v636_v23, %s1463_s27 }
0x10c6   :  { %v639_v24 = vpop.permute.xlu1 %638 }
0x10c7   :  { %1241 = vmatmul.mubr.msk.bf16.vlgmr.msra.gmra.mrb[12].mxu0 %vm207_vm2, %v639_v24 }
0x119a   :  { %v677_v29 = vpop.f32.mrb[12].mxu0 }
0x119b   :  { %v683_v30 = vadd.f32 %v677_v29, %v184_v28  ;;  %v1242_v31 = vpop.f32.mrb[13].mxu0 }
0x119c   :  { %v680_v32 = vpop.f32.mrb[14].mxu0 }
0x119d   :  { %1321 = vtanh.f32 %v683_v30  ;;  %v1243_v33 = vpop.f32.mrb[15].mxu0  ;;  %v1112_v35 = vmul.f32 -1.442695, %v683_v30 }
0x119f   :  { %1323 = vpow2.f32 %v1112_v35 }
0x11a7   :  { %v1322_v34 = vpop.eup %1321 }
0x11a8   :  { %693 = vrot.lane.b32.xlu0 %v1322_v34, %s1452_s1 }
0x11a9   :  { %v1324_v36 = vpop.eup %1323 }
0x11aa   :  { %v687_v37 = vadd.f32 1.0, %v1324_v36 }
0x11ac   :  { %1325 = vrcp.f32 %v687_v37 }
0x11b6   :  { %v1326_v38 = vpop.eup %1325 }
0x11b7   :  { %v691_v41 = vmul.f32 %v1326_v38, %v629_v19 }
0x121a   :  { %v694_v39 = vpop.permute.xlu0 %693 }
0x121b   :  { %v696_v40 = vmul.f32 %v1326_v38, %v694_v39 }
0x121d   :  { %698 = vrot.lane.b32.xlu1 %v696_v40, %s1463_s27 }
0x128f   :  { %v699_v42 = vpop.permute.xlu1 %698 }
0x1290   :  { %v701_v43 = vadd.f32 %v699_v42, %v691_v41 }
0x1292   :  { %1327 = vtanh.f32 %v701_v43 }
0x129c   :  { %v1328_v44 = vpop.eup %1327 }
0x129d   :  { %704 = vrot.lane.b32.xlu0 %v1328_v44, %s1452_s1 }
0x130f   :  { %v705_v45 = vpop.permute.xlu0 %704 }
0x1310   :  { %v707_v46 = vmul.f32 %v1326_v38, %v705_v45 }
0x1312   :  { %v708_v47 = vpack.c.bf16 %v707_v46, %v707_v46 }
0x1314   :  { %710 = vrot.lane.b32.xlu1 %v708_v47, %s1463_s27 }
0x1386   :  { %v711_v48 = vpop.permute.xlu1 %710 }
0x1387   :  { %1249 = vmatmul.mubr.msk.bf16.vlgmr.msra.gmra.mrb[12].mxu1 %vm207_vm2, %v711_v48 }
0x145a   :  { %v749_v53 = vpop.f32.mrb[12].mxu1 }
0x145b   :  { %v755_v54 = vadd.f32 %v749_v53, %v194_v52  ;;  %v1250_v55 = vpop.f32.mrb[13].mxu1 }
0x145c   :  { %v752_v56 = vpop.f32.mrb[14].mxu1 }
0x145d   :  { %1329 = vtanh.f32 %v755_v54  ;;  %v1251_v57 = vpop.f32.mrb[15].mxu1  ;;  %v1114_v59 = vmul.f32 -1.442695, %v755_v54 }
0x145f   :  { %1331 = vpow2.f32 %v1114_v59 }
0x1467   :  { %v1330_v58 = vpop.eup %1329 }
0x1468   :  { %765 = vrot.lane.b32.xlu0 %v1330_v58, %s1452_s1 }
0x1469   :  { %v1332_v60 = vpop.eup %1331 }
0x146a   :  { %v759_v61 = vadd.f32 1.0, %v1332_v60 }
0x146c   :  { %1333 = vrcp.f32 %v759_v61 }
0x1476   :  { %v1334_v62 = vpop.eup %1333 }
0x1477   :  { %v763_v5 = vmul.f32 %v1334_v62, %v701_v43 }
0x14da   :  { %v766_v63 = vpop.permute.xlu0 %765 }
0x14db   :  { %v768_v4 = vmul.f32 %v1334_v62, %v766_v63 }
0x14dd   :  { %770 = vrot.lane.b32.xlu1 %v768_v4, %s1463_s27 }
0x154f   :  { %v771_v6 = vpop.permute.xlu1 %770 }
0x1550   :  { %v773_v7 = vadd.f32 %v771_v6, %v763_v5 }
0x1551   :  { %1400 = shalt.err (!%p1397_p7)  }
0x1552   :  { %s1401_s17 = scalar_lea.vmem %s107_s9, 4096  ;;  %p1406_p9 = scmp.lt.s32.totalorder %s107_s9, %s107_s9 }
0x1553   :  { %p1402_p8 = scmp.ne.s32.totalorder %s107_s9, %s1401_s17  ;;  %p1407_p10 = scmp.lt.s32.totalorder %s1401_s17, %s1401_s17 }
0x1555   :  { %p1408_p11 = por %p1407_p10, %p1406_p9 }
0x1557   :  { %p1409_p12 = pnand %p1408_p11, %p1402_p8 }
0x1559   :  { %1412 = shalt.err (!%p1409_p12)  }
0x155a   :  { %109 = dma.hbm_to_vmem [thread:$0]  %s1695_s6, 4096, %s107_s9, [#allocation4 + $0x1]  ;;  %1335 = vtanh.f32 %v773_v7 }
0x1564   :  { %v1336_v8 = vpop.eup %1335 }
0x1565   :  { %776 = vrot.lane.b32.xlu0 %v1336_v8, %s1452_s1 }
0x15d7   :  { %v777_v9 = vpop.permute.xlu0 %776 }
0x15d8   :  { %v779_v10 = vmul.f32 %v1334_v62, %v777_v9 }
0x15d9   :  { %1441 = dma.done.wait [#allocation4], 1024 }
0x15da   :  { %1442 = vsyncadd [#allocation4], 4294966272  ;;  %v788_v1 = vpack.c.bf16 %v779_v10, %v779_v10 }
0x15db   :  { %1443 = dma.done.wait [#allocation4 + $0x1], 4096 }
0x15dc   :  { %1444 = vsyncadd [#allocation4 + $0x1], 4294963200  ;;  %857 = vmatprep.mubr.bf16.mxu0 %v1462_v3  ;;  %898 = vmatprep.mubr.bf16.mxu1 %v1462_v3  ;;  %v790_v11 = vld [vmem:[#allocation2 + $0x8] sm:$0xff]  ;;  %v792_v12 = vld [vmem:[#allocation2 + $0x18] sm:$0xff]  ;;  %v799_v49 = vlaneseq  ;;  %s1465_s19 = smov [#allocation12]  }
0x15dd   :  { %820 = vrot.lane.b32.xlu0 %v788_v1, %s1463_s27  ;;  %v789_v0 = vld [vmem:[#allocation2] sm:$0xff]  ;;  %825 = vmatprep.subr.bf16.mxu0 %v790_v11  ;;  %v791_v2 = vld [vmem:[#allocation2 + $0x10] sm:$0xff]  ;;  %v794_v13 = vld [vmem:[#allocation2 + $0x28] sm:$0xff]  ;;  %s1041_s20 = sshll.u32 %s1465_s19, 4  ;;  %s1042_s20 = int_to_ptr.vmem [resolvable:$true] %s1041_s20 }
0x15de   :  { %866 = vmatprep.subr.bf16.mxu1 %v792_v12  ;;  %v796_v14 = vld [vmem:[#allocation2 + $0x38] sm:$0xff]  ;;  %826 = vmatpush1.bf16.msra.mxu0 %v789_v0  ;;  %v793_v15 = vld [vmem:[#allocation2 + $0x20] sm:$0xff]  ;;  %v795_v16 = vld [vmem:[#allocation2 + $0x30] sm:$0xff]  ;;  %v800_v50 = vshrl.u32 %v799_v49, 7  ;;  %s1413_s21 = scalar_lea.vmem %s1042_s20, 32  ;;  %p1418_p0 = scmp.lt.s32.totalorder %s1042_s20, %s1042_s20 }
0x15df   :  { %867 = vmatpush1.bf16.msra.mxu1 %v791_v2  ;;  %827 = vmatprep.subr.bf16.mxu0 %v794_v13  ;;  %v923_v17 = vld [vmem:[#allocation3 + $0x40] sm:$0xff]  ;;  %v924_v21 = vld [vmem:[#allocation3 + $0x48] sm:$0xff]  ;;  %v925_v25 = vld [vmem:[#allocation3 + $0x50] sm:$0xff]  ;;  %p1414_p13 = scmp.ne.s32.totalorder %s1042_s20, %s1413_s21  ;;  %p1419_p1 = scmp.lt.s32.totalorder %s1413_s21, %s1413_s21 }
0x15e0   :  { %868 = vmatprep.subr.bf16.mxu1 %v796_v14  ;;  %v939_v18 = vld [vmem:[#allocation3 + $0xc0] sm:$0xff]  ;;  %v940_v22 = vld [vmem:[#allocation3 + $0xc8] sm:$0xff]  ;;  %v941_v26 = vld [vmem:[#allocation3 + $0xd0] sm:$0xff]  ;;  %v801_v51 = vsub.s32 0, %v800_v50  ;;  %v809_v52 = vsub.s32 2, %v800_v50  ;;  %v805_v54 = vsub.s32 1, %v800_v50 }
0x15e1   :  { %v915_v3 = vld [vmem:[#allocation3] sm:$0xff]  ;;  %v916_v23 = vld [vmem:[#allocation3 + $0x8] sm:$0xff]  ;;  %v917_v27 = vld [vmem:[#allocation3 + $0x10] sm:$0xff]  ;;  %v813_v55 = vsub.s32 3, %v800_v50  ;;  %p1420_p2 = por %p1419_p1, %p1418_p0 }
0x15e2   :  { %828 = vmatpush1.bf16.msra.mxu0 %v793_v15  ;;  %v931_v19 = vld [vmem:[#allocation3 + $0x80] sm:$0xff]  ;;  %v932_v24 = vld [vmem:[#allocation3 + $0x88] sm:$0xff]  ;;  %v933_v28 = vld [vmem:[#allocation3 + $0x90] sm:$0xff] }
0x15e3   :  { %869 = vmatpush1.bf16.msra.mxu1 %v795_v16  ;;  %1144 = vmatprep.subr.bf16.mxu0 %v923_v17  ;;  %v926_v29 = vld [vmem:[#allocation3 + $0x58] sm:$0xff]  ;;  %v927_v33 = vld [vmem:[#allocation3 + $0x60] sm:$0xff]  ;;  %v928_v37 = vld [vmem:[#allocation3 + $0x68] sm:$0xff]  ;;  %p1421_p3 = pnand %p1420_p2, %p1414_p13 }
0x15e4   :  { %1166 = vmatprep.subr.bf16.mxu1 %v939_v18  ;;  %v942_v30 = vld [vmem:[#allocation3 + $0xd8] sm:$0xff]  ;;  %v943_v34 = vld [vmem:[#allocation3 + $0xe0] sm:$0xff]  ;;  %v944_v38 = vld [vmem:[#allocation3 + $0xe8] sm:$0xff] }
0x15e5   :  { %v918_v31 = vld [vmem:[#allocation3 + $0x18] sm:$0xff]  ;;  %v919_v35 = vld [vmem:[#allocation3 + $0x20] sm:$0xff]  ;;  %v920_v39 = vld [vmem:[#allocation3 + $0x28] sm:$0xff] }
0x15e6   :  { %v934_v32 = vld [vmem:[#allocation3 + $0x98] sm:$0xff]  ;;  %v935_v36 = vld [vmem:[#allocation3 + $0xa0] sm:$0xff]  ;;  %v936_v40 = vld [vmem:[#allocation3 + $0xa8] sm:$0xff] }
0x15e7   :  { %v929_v41 = vld [vmem:[#allocation3 + $0x70] sm:$0xff]  ;;  %v930_v45 = vld [vmem:[#allocation3 + $0x78] sm:$0xff] }
0x15e8   :  { %v945_v42 = vld [vmem:[#allocation3 + $0xf0] sm:$0xff]  ;;  %v946_v46 = vld [vmem:[#allocation3 + $0xf8] sm:$0xff] }
0x15e9   :  { %v921_v43 = vld [vmem:[#allocation3 + $0x30] sm:$0xff]  ;;  %v922_v47 = vld [vmem:[#allocation3 + $0x38] sm:$0xff] }
0x15ea   :  { %v937_v44 = vld [vmem:[#allocation3 + $0xb0] sm:$0xff]  ;;  %v938_v48 = vld [vmem:[#allocation3 + $0xb8] sm:$0xff] }
0x15eb   :  { %v797_v53 = vld [vmem:[%s1692_s3] sm:$0xf] }
0x15ec   :  { %v802_v56 = vrot.slane %v797_v53, %v801_v51  ;;  %v810_v57 = vrot.slane %v797_v53, %v809_v52  ;;  %v806_v58 = vrot.slane %v797_v53, %v805_v54  ;;  %v814_v59 = vrot.slane %v797_v53, %v813_v55 }
0x164f   :  { %v821_v20 = vpop.permute.xlu0 %820 }
0x1650   :  { %1115 = vmatmul.mubr.msk.bf16.vlgmr.msra.gmra.mrb[16].mxu0 %vm207_vm2, %v821_v20  ;;  %1116 = vmatmul.mubr.msk.bf16.vlgmr.msra.gmra.mrb[16].mxu1 %vm207_vm2, %v821_v20 }
0x1651   :  { %1145 = vmatpush3.bf16.msra.mxu0 %v915_v3  ;;  %1167 = vmatpush3.bf16.msra.mxu1 %v931_v19  ;;  %v1117_v3 = vld [vmem:[%s1693_s4] ss:$0 sm:$0xff] }
0x1652   :  { %1146 = vmatprep.subr.bf16.mxu0 %v924_v21  ;;  %1168 = vmatprep.subr.bf16.mxu1 %v940_v22 }
0x1655   :  { %1147 = vmatpush3.bf16.msra.mxu0 %v916_v23  ;;  %1169 = vmatpush3.bf16.msra.mxu1 %v932_v24 }
0x1656   :  { %1148 = vmatprep.subr.bf16.mxu0 %v925_v25  ;;  %1170 = vmatprep.subr.bf16.mxu1 %v941_v26 }
0x1659   :  { %1149 = vmatpush3.bf16.msra.mxu0 %v917_v27  ;;  %1171 = vmatpush3.bf16.msra.mxu1 %v933_v28 }
0x165a   :  { %1150 = vmatprep.subr.bf16.mxu0 %v926_v29  ;;  %1172 = vmatprep.subr.bf16.mxu1 %v942_v30 }
0x165d   :  { %1151 = vmatpush3.bf16.msra.mxu0 %v918_v31  ;;  %1173 = vmatpush3.bf16.msra.mxu1 %v934_v32 }
0x165e   :  { %1152 = vmatprep.subr.bf16.mxu0 %v927_v33  ;;  %1174 = vmatprep.subr.bf16.mxu1 %v943_v34 }
0x1661   :  { %1153 = vmatpush3.bf16.msra.mxu0 %v919_v35  ;;  %1175 = vmatpush3.bf16.msra.mxu1 %v935_v36 }
0x1662   :  { %1154 = vmatprep.subr.bf16.mxu0 %v928_v37  ;;  %1176 = vmatprep.subr.bf16.mxu1 %v944_v38 }
0x1665   :  { %1155 = vmatpush3.bf16.msra.mxu0 %v920_v39  ;;  %1177 = vmatpush3.bf16.msra.mxu1 %v936_v40 }
0x1666   :  { %1156 = vmatprep.subr.bf16.mxu0 %v929_v41  ;;  %1178 = vmatprep.subr.bf16.mxu1 %v945_v42 }
0x1669   :  { %1157 = vmatpush3.bf16.msra.mxu0 %v921_v43  ;;  %1179 = vmatpush3.bf16.msra.mxu1 %v937_v44 }
0x166a   :  { %1158 = vmatprep.subr.bf16.mxu0 %v930_v45  ;;  %1180 = vmatprep.subr.bf16.mxu1 %v946_v46 }
0x166d   :  { %1159 = vmatpush3.bf16.msra.mxu0 %v922_v47  ;;  %1181 = vmatpush3.bf16.msra.mxu1 %v938_v48 }
0x1723   :  { %v859_v60 = vpop.f32.mrb[16].mxu0  ;;  %v900_v61 = vpop.f32.mrb[16].mxu1 }
0x1724   :  { %v860_v62 = vadd.f32 %v859_v60, %v802_v56  ;;  %v901_v63 = vadd.f32 %v900_v61, %v810_v57  ;;  %v861_v4 = vpop.f32.mrb[17].mxu0  ;;  %v902_v5 = vpop.f32.mrb[17].mxu1 }
0x1725   :  { %v862_v6 = vadd.f32 %v861_v4, %v806_v58  ;;  %v903_v7 = vadd.f32 %v902_v5, %v814_v59  ;;  %v863_v8 = vpop.f32.mrb[18].mxu0  ;;  %v904_v9 = vpop.f32.mrb[18].mxu1 }
0x1726   :  { %v907_v10 = vmax.f32 %v860_v62, 0.0  ;;  %v909_v1 = vmax.f32 %v901_v63, 0.0  ;;  %v864_v11 = vpop.f32.mrb[19].mxu0  ;;  %v905_v12 = vpop.f32.mrb[19].mxu1 }
0x1727   :  { %v908_v0 = vmax.f32 %v862_v6, 0.0  ;;  %v910_v2 = vmax.f32 %v903_v7, 0.0 }
0x1728   :  { %v911_v15 = vpack.c.bf16 %v907_v10, %v907_v10  ;;  %v913_v16 = vpack.c.bf16 %v909_v1, %v909_v1 }
0x1729   :  { %v912_v13 = vpack.c.bf16 %v908_v0, %v908_v0  ;;  %v914_v14 = vpack.c.bf16 %v910_v2, %v910_v2 }
0x172b   :  { %986 = vmatprep.mubr.bf16.mxu0 %v912_v13  ;;  %1026 = vmatprep.mubr.bf16.mxu1 %v914_v14 }
0x172c   :  { %987 = vmatmul.mubr.bf16.vlgmr.msra.gmra.mrb[20].mxu0 %v911_v15  ;;  %1027 = vmatmul.mubr.bf16.vlgmr.msra.gmra.mrb[20].mxu1 %v913_v16 }
0x17ff   :  { %v1160_v17 = vpop.f32.mrb[20].mxu0  ;;  %v1182_v18 = vpop.f32.mrb[20].mxu1 }
0x1800   :  { %v1161_v19 = vpop.f32.mrb[21].mxu0  ;;  %v1183_v20 = vpop.f32.mrb[21].mxu1 }
0x1801   :  { %v1162_v21 = vadd.f32 %v1161_v19, %v1160_v17  ;;  %v1184_v22 = vadd.f32 %v1183_v20, %v1182_v18  ;;  %v1163_v23 = vpop.f32.mrb[22].mxu0  ;;  %v1185_v24 = vpop.f32.mrb[22].mxu1 }
0x1802   :  { %v1164_v25 = vpop.f32.mrb[23].mxu0  ;;  %v1186_v26 = vpop.f32.mrb[23].mxu1 }
0x1803   :  { %v989_v27 = vadd.f32 %v1162_v21, %v1117_v3 }
0x1805   :  { %v1029_v28 = vadd.f32 %v1184_v22, %v989_v27 }
0x1807   :  { %1034 = vst [vmem:[#allocation12] sm:$0x3] %v1029_v28 }
0x1808   :  { %1424 = shalt.err (!%p1421_p3)
}
0x1809   :  { %s1425_s23 = scalar_lea.hbm %s1696_s7, 32 }
0x180a   :  { %p1426_p4 = scmp.ne.s32.totalorder %s1696_s7, %s1425_s23  ;;  %p1429_p5 = scmp.lt.u32.totalorder %s1425_s23, %s1696_s7 }
0x180c   :  { %p1431_p6 = pnand %p1429_p5, %p1426_p4 }
0x180e   :  { %1434 = shalt.err (!%p1431_p6)
}
0x180f   :  { %1044 = dma.vmem_to_hbm [thread:$0]  %s1042_s20, 32, %s1696_s7, [#allocation7]  }
0x1810   :  { %1445 = dma.done.wait [#allocation7], 32  }
0x1811   :  { %1446 = vsyncadd [#allocation7], 4294967264 }
0x1812   :  { %1048 = vsyncpa [#allocation6], 1 }
0x1813   :  { %1049 = vsyncpa [#allocation11], 1 }
0x1814   :  { %1050 = vsyncpa [#allocation7], 1 }
0x1815   :  { %1051 = vsyncpa [#allocation8], 1 }
0x1816   :  { %1052 = vsyncmov [#allocation4] }
0x1819   :  { %s1053_s29 = vpop.sfrf %1052 }
0x181a   :  { %p1118_p7 = scmp.ne.s32.totalorder %s1053_s29, 0 }
0x181c   :  { %1057 = shalt.err (%p1118_p7)  }
0x181d   :  { %1059 = vsyncmov [#allocation4 + $0x1] }
0x1820   :  { %s1060_s30 = vpop.sfrf %1059 }
0x1821   :  { %p1119_p8 = scmp.ne.s32.totalorder %s1060_s30, 0 }
0x1823   :  { %1064 = shalt.err (%p1119_p8)  }

</bundles_post_ra>
